<compile_context>
chip_gen: v5e
topology: v5e:2x2
jax: 0.10.0
libtpu: 0.0.40
codegen_flags: <defaults>
</compile_context>

<pallas_src>
import math

import jax
import jax.numpy as jnp
from jax import lax
from jax.experimental import pallas as pl
from jax.experimental.pallas import tpu as pltpu


def _mu_only_kernel(x_ref, w_ref, mu_ref):
    # mu = x @ W^T via dot_general contracting dim 1 of both operands (no w.T).
    mu = lax.dot_general(
        x_ref[...], w_ref[...],
        dimension_numbers=(((1,), (1,)), ((), ())),
        preferred_element_type=jnp.float32)
    mu_ref[...] = mu.astype(mu_ref.dtype)


def _mu_logp_kernel(x_ref, w_ref, act_ref, coef_ref, bias_ref, mu_ref, logp_ref):
    # x_ref:    [TB, D]
    # w_ref:    [A, D]    (resident across grid steps)
    # act_ref:  [TB, A]
    # coef_ref: [1, A]    = -0.5 * exp(-2*log_std)            (resident)
    # bias_ref: [1, 1]    = -(sum(log_std) + 0.5*A*log(2*pi)) (resident)
    # mu_ref:   [TB, A]
    # logp_ref: [1, TB]   lane-dense
    mu = lax.dot_general(
        x_ref[...], w_ref[...],
        dimension_numbers=(((1,), (1,)), ((), ())),
        preferred_element_type=jnp.float32)                    # [TB, A]
    mu_ref[...] = mu.astype(mu_ref.dtype)

    diff = act_ref[...].astype(jnp.float32) - mu               # [TB, A]
    sq = diff * diff
    # Weighted row-sum on the MXU: coef[1,A] contracted with sq[TB,A] over A
    # gives a lane-dense [1, TB] row (no cross-lane XLU reduce / relayout).
    wsum = lax.dot_general(
        coef_ref[...], sq,
        dimension_numbers=(((1,), (1,)), ((), ())),
        preferred_element_type=jnp.float32)                    # [1, TB]
    logp_ref[...] = wsum + bias_ref[...]


def _pick_batch_tile(batch):
    # Single tile for small batches; otherwise the largest 128-multiple tile
    # (<= 1024 rows) that divides the batch. 1024 rows keeps the double-buffered
    # x/act/mu tiles comfortably under v7x's 64 MiB VMEM (and v5e/v6e's 128 MiB)
    # for typical feature dims.
    if batch <= 1024:
        return batch
    for tb in (1024, 512, 256, 128):
        if batch % tb == 0:
            return tb
    return batch  # irregular batch: fall back to one full-array block


def gaussian_head_forward(x, mu_weight, log_std, act=None, deterministic=True):
    """Pallas-backed forward of GaussianHead.

    Returns ((mu, std), pi_action, logp_a), mirroring (pi, pi_action, logp_a)
    of the PyTorch module (pi represented by its (mu, std) parameters).
    """
    if not deterministic:
        # TODO(synk): rsample() (mu + std * N(0,1)) needs an in-kernel PRNG draw
        # (pltpu.prng_seed / pltpu.stateful_normal); only the deterministic path
        # is kernelized here.
        raise NotImplementedError("Only the deterministic path is kernelized.")

    batch, in_dim = x.shape
    act_dim = mu_weight.shape[0]
    assert mu_weight.shape == (act_dim, in_dim)

    log_std_f32 = jnp.asarray(log_std, dtype=jnp.float32).reshape(act_dim)
    std = jnp.exp(log_std_f32)

    w = jnp.asarray(mu_weight).astype(x.dtype)   # keep matmul inputs in x's dtype
    tb = _pick_batch_tile(batch)
    grid = (batch // tb,)
    cparams = pltpu.CompilerParams(dimension_semantics=("parallel",))

    x_spec = pl.BlockSpec((tb, in_dim), lambda i: (i, 0))
    w_spec = pl.BlockSpec((act_dim, in_dim), lambda i: (0, 0))
    mu_spec = pl.BlockSpec((tb, act_dim), lambda i: (i, 0))

    # logp(act == mu) closed form: -sum(log_std) - 0.5*A*log(2*pi)
    logp_const = -(jnp.sum(log_std_f32) + 0.5 * act_dim * math.log(2.0 * math.pi))

    if act is None:
        # Module fallback scores its own deterministic action (== mu): the
        # log-prob is a per-row constant, so only the matmul needs a kernel.
        mu = pl.pallas_call(
            _mu_only_kernel,
            out_shape=jax.ShapeDtypeStruct((batch, act_dim), x.dtype),
            grid=grid,
            in_specs=[x_spec, w_spec],
            out_specs=mu_spec,
            compiler_params=cparams,
        )(x, w)
        logp_a = jnp.broadcast_to(logp_const.astype(jnp.float32), (batch,))
    else:
        act_arr = jnp.asarray(act)
        assert act_arr.shape == (batch, act_dim)
        coef = (-0.5 * jnp.exp(-2.0 * log_std_f32)).reshape(1, act_dim)
        bias = logp_const.astype(jnp.float32).reshape(1, 1)
        mu, logp2d = pl.pallas_call(
            _mu_logp_kernel,
            out_shape=(
                jax.ShapeDtypeStruct((batch, act_dim), x.dtype),
                jax.ShapeDtypeStruct((1, batch), jnp.float32),
            ),
            grid=grid,
            in_specs=[
                x_spec,
                w_spec,
                pl.BlockSpec((tb, act_dim), lambda i: (i, 0)),
                pl.BlockSpec((1, act_dim), lambda i: (0, 0)),
                pl.BlockSpec((1, 1), lambda i: (0, 0)),
            ],
            out_specs=(
                mu_spec,
                pl.BlockSpec((1, tb), lambda i: (0, i)),
            ),
            compiler_params=cparams,
        )(x, w, act_arr, coef, bias)
        logp_a = logp2d[0]

    pi = (mu, std)          # Normal(mu, std) parameters
    pi_action = mu          # deterministic => pi.mean
    return pi, pi_action, logp_a


def _reference(x, mu_weight, log_std, act=None):
    mu = x @ mu_weight.T
    std = jnp.exp(log_std)
    action = mu
    value = mu if act is None else act
    var = std ** 2
    log_prob = (-((value - mu) ** 2) / (2 * var)
                - log_std
                - math.log(math.sqrt(2 * math.pi)))
    return mu, action, jnp.sum(log_prob, axis=-1)


if __name__ == "__main__":
    key = jax.random.PRNGKey(0)
    k1, k2, k3, k4 = jax.random.split(key, 4)

    # Small shapes consistent with the module (input_dim features -> act_dim actions).
    batch, input_dim, act_dim = 8, 32, 8

    x = jax.random.normal(k1, (batch, input_dim), dtype=jnp.float32)
    # nn.Linear(input_dim, act_dim, bias=False): weight shape [act_dim, input_dim]
    bound = 1.0 / math.sqrt(input_dim)
    mu_weight = jax.random.uniform(k2, (act_dim, input_dim),
                                   minval=-bound, maxval=bound, dtype=jnp.float32)
    log_std = -0.5 * jnp.ones((act_dim,), dtype=jnp.float32)
    act = jax.random.normal(k3, (batch, act_dim), dtype=jnp.float32)

    # Path 1: act=None (module scores its own deterministic action == mu).
    (mu1, std1), pi_action1, logp1 = gaussian_head_forward(
        x, mu_weight, log_std, act=None, deterministic=True)
    # Path 2: explicit act.
    (mu2, std2), pi_action2, logp2 = gaussian_head_forward(
        x, mu_weight, log_std, act=act, deterministic=True)
    # Path 3: larger batch to exercise the tiled grid (nb > 1) and the
    # lane-dense (1, tb) logp blocks.
    big_b = 2048
    xb = jax.random.normal(k4, (big_b, input_dim), dtype=jnp.float32)
    actb = jax.random.normal(k3, (big_b, act_dim), dtype=jnp.float32)
    (mu3, _), _, logp3 = gaussian_head_forward(
        xb, mu_weight, log_std, act=actb, deterministic=True)

    jax.block_until_ready((mu1, logp1, mu2, logp2, mu3, logp3))

    r_mu1, r_act1, r_logp1 = _reference(x, mu_weight, log_std, act=None)
    r_mu2, r_act2, r_logp2 = _reference(x, mu_weight, log_std, act=act)
    r_mu3, _, r_logp3 = _reference(xb, mu_weight, log_std, act=actb)

    assert jnp.allclose(mu1, r_mu1, atol=1e-5, rtol=1e-5)
    assert jnp.allclose(pi_action1, r_act1, atol=1e-5, rtol=1e-5)
    assert jnp.allclose(logp1, r_logp1, atol=1e-5, rtol=1e-5)
    assert jnp.allclose(mu2, r_mu2, atol=1e-5, rtol=1e-5)
    assert jnp.allclose(logp2, r_logp2, atol=1e-3, rtol=1e-4)
    assert jnp.allclose(mu3, r_mu3, atol=1e-5, rtol=1e-5)
    assert jnp.allclose(logp3, r_logp3, atol=1e-3, rtol=1e-4)
    assert jnp.allclose(std1, jnp.exp(log_std))

    print("KERNEL_OK")
</pallas_src>

<mosaic_0001>
module attributes {stable_mosaic.version = 11 : i64} {
  func.func @_mu_only_kernel(%arg0: i32, %arg1: memref<8x32xf32, #tpu.memory_space<vmem>>, %arg2: memref<8x32xf32, #tpu.memory_space<vmem>>, %arg3: memref<8x8xf32, #tpu.memory_space<vmem>>) attributes {dimension_semantics = [#tpu.dimension_semantics<parallel>], iteration_bounds = array<i64: 1>, scalar_prefetch = 0 : i64, scratch_operands = 0 : i64, tpu.core_type = #tpu.core_type<tc>, window_params = [{transform_indices = @transform_0, window_bounds = array<i64: 8, 32>}, {pipeline_mode = #tpu.pipeline_mode<synchronous>, transform_indices = @transform_1, window_bounds = array<i64: 8, 32>}, {transform_indices = @transform_2, window_bounds = array<i64: 8, 8>}]} {
    %c0 = arith.constant 0 : index
    %c0_0 = arith.constant 0 : index
    %0 = vector.load %arg1[%c0, %c0_0] : memref<8x32xf32, #tpu.memory_space<vmem>>, vector<8x32xf32>
    %c0_1 = arith.constant 0 : index
    %c0_2 = arith.constant 0 : index
    %1 = vector.load %arg2[%c0_1, %c0_2] : memref<8x32xf32, #tpu.memory_space<vmem>>, vector<8x32xf32>
    %cst = arith.constant dense<0.000000e+00> : vector<8x8xf32>
    %2 = tpu.matmul %0, %1, %cst {dimension_numbers = #tpu.dot_dimension_numbers<[1], [1], [0], [0], [0, 0, 1, 0], [], []>} : vector<8x32xf32>, vector<8x32xf32>, vector<8x8xf32> -> vector<8x8xf32>
    %c0_3 = arith.constant 0 : index
    %c0_4 = arith.constant 0 : index
    %3 = vector.load %arg3[%c0_3, %c0_4] : memref<8x8xf32, #tpu.memory_space<vmem>>, vector<8x8xf32>
    tpu.vector_store %arg3[%c0_3, %c0_4], %2 {strides = array<i32>} : memref<8x8xf32, #tpu.memory_space<vmem>>, vector<8x8xf32>,
    return
  }
  func.func @transform_0(%arg0: i32) -> (i32, i32) {
    %c0_i32 = arith.constant 0 : i32
    %c0_i32_0 = arith.constant 0 : i32
    return %arg0, %c0_i32 : i32, i32
  }
  func.func @transform_1(%arg0: i32) -> (i32, i32) {
    %c0_i32 = arith.constant 0 : i32
    %c0_i32_0 = arith.constant 0 : i32
    %c0_i32_1 = arith.constant 0 : i32
    return %c0_i32, %c0_i32_0 : i32, i32
  }
  func.func @transform_2(%arg0: i32) -> (i32, i32) {
    %c0_i32 = arith.constant 0 : i32
    %c0_i32_0 = arith.constant 0 : i32
    return %arg0, %c0_i32 : i32, i32
  }
}

</mosaic_0001>

<bundles_post_ra>
// kernel: tpu_custom_call.1
= control target key start
LH: loop header
LB: loop body
LE: loop exit
PB: predicated region body
PF: predicated region fallthrough
CT: control target
= control target key end

     0   :  { %7 = vsyncpa [#allocation3], 0  ;;  %s199_s0 = inlined_call_operand.hbm [shape: f32[8,32], index: 0, kind: input, shape index: {}]   ;;  %s200_s1 = inlined_call_operand.hbm [shape: f32[8,32], index: 1, kind: input, shape index: {}]   ;;  %s201_s2 = inlined_call_operand.hbm [shape: f32[8,8], index: 2, kind: output, shape index: {}]  }
   0x1   :  { %8 = vsyncpa [#allocation6], 0 }
   0x2   :  { %9 = vsyncpa [#allocation4], 0  ;;  %s15_s11 = sshll.u32 %s199_s0, 4  ;;  %s172_s12 = smov [#allocation2]   ;;  %s16_s11 = int_to_ptr.hbm [resolvable:$true] %s15_s11 }
   0x3   :  { %s17_s13 = sshll.u32 %s172_s12, 4  ;;  %s26_s16 = sshll.u32 %s200_s1, 4  ;;  %s18_s13 = int_to_ptr.vmem [resolvable:$true] %s17_s13  ;;  %s27_s16 = int_to_ptr.hbm [resolvable:$true] %s26_s16 }
   0x4   :  { %20 = dma.hbm_to_vmem [thread:$0]  %s16_s11, 128, %s18_s13, [#allocation3]  }
   0x5   :  { %s173_s17 = smov [#allocation5]  }
   0x6   :  { %s28_s18 = sshll.u32 %s173_s17, 4  ;;  %s29_s18 = int_to_ptr.vmem [resolvable:$true] %s28_s18 }
   0x7   :  { %31 = dma.hbm_to_vmem [thread:$0]  %s27_s16, 128, %s29_s18, [#allocation6]  }
   0x8   :  { %166 = dma.done.wait [#allocation3], 128  }
   0x9   :  { %167 = vsyncadd [#allocation3], 4294967168 }
   0xa   :  { %168 = dma.done.wait [#allocation6], 128  }
   0xb   :  { %169 = vsyncadd [#allocation6], 4294967168  ;;  %vm42_vm0 = vcmask 261120   ;;  %v41_v0 = vld [vmem:[#allocation5] sm:$0xff]  ;;  %v40_v1 = vld [vmem:[#allocation2] sm:$0xff]  ;;  %s174_s0 = smov [#allocation7]  }
   0xc   :  { %89 = vmatpush.xpose.msk.msra.mxu0 %vm42_vm0, %v41_v0  ;;  %s76_s19 = sshll.u32 %s174_s0, 4  ;;  %s78_s1 = sshll.u32 %s201_s2, 4  ;;  %vm69_vm1 = vcmask 64512   ;;  %s77_s19 = int_to_ptr.vmem [resolvable:$true] %s76_s19  ;;  %s79_s1 = int_to_ptr.hbm [resolvable:$true] %s78_s1 }
   0xf   :  { %90 = vmatmul.msk.f32.vlgmr.msra.gmra.mxu0 %vm42_vm0, %v40_v1 }
  0x8c   :  { %v66_v2 = vpop.f32.mrf.mxu0 }
  0x8d   :  { %70 = vst.msk [vmem:[#allocation7] sm:$0xff] %vm69_vm1, %v66_v2 }
  0x8e   :  { %81 = dma.vmem_to_hbm [thread:$0]  %s77_s19, 128, %s79_s1, [#allocation4]  }
  0x8f   :  { %170 = dma.done.wait [#allocation4], 128  }
  0x90   :  { %171 = vsyncadd [#allocation4], 4294967168 }
  0x91   :  { %86 = vsyncpa [#allocation3], 1 }
  0x92   :  { %87 = vsyncpa [#allocation6], 1 }
  0x93   :  { %88 = vsyncpa [#allocation4], 1 }

</bundles_post_ra>
